<compile_context>
chip_gen: v7x
topology: tpu7x:2x2x1
jax: 0.10.0
libtpu: 0.0.40
codegen_flags: <defaults>
</compile_context>

<pallas_src>
import jax
import jax.numpy as jnp
from jax.experimental import pallas as pl
from jax.experimental.pallas import tpu as pltpu

EPS = 1e-5
VMEM_LIMIT = 48 * 1024 * 1024  # explicit scoped-VMEM budget (fits v7x's 64 MiB)


def _round_up(x, m):
    return (x + m - 1) // m * m


# ---------------------------------------------------------------------------
# Pallas kernels
# ---------------------------------------------------------------------------
def _bn_relu_kernel(x_ref, scale_ref, bias_ref, o_ref):
    # x: (tm, C) f32, scale/bias: (1, C) f32 -> o = relu(x*scale + bias), bf16
    acc = x_ref[...].astype(jnp.float32) * scale_ref[...] + bias_ref[...]
    o_ref[...] = jnp.maximum(acc, 0.0).astype(o_ref.dtype)


def _make_gemm_kernel(has_res, has_bn):
    """GEMM with optional fused residual-add and BN(scale/bias)+ReLU epilogue."""

    def kernel(*refs):
        it = iter(refs)
        a_ref = next(it)                      # (tm, K)  bf16
        b_ref = next(it)                      # (K,  N)  bf16
        res_ref = next(it) if has_res else None      # (tm, N) f32
        scale_ref = next(it) if has_bn else None      # (1, N)  f32
        bias_ref = next(it) if has_bn else None       # (1, N)  f32
        o_ref = next(it)                      # (tm, N)

        acc = jnp.dot(a_ref[...], b_ref[...],
                      preferred_element_type=jnp.float32)
        if has_res:
            acc = acc + res_ref[...].astype(jnp.float32)
        if has_bn:
            acc = jnp.maximum(acc * scale_ref[...] + bias_ref[...], 0.0)
        o_ref[...] = acc.astype(o_ref.dtype)

    return kernel


# ---------------------------------------------------------------------------
# Pallas wrappers (row-tiled grids)
# ---------------------------------------------------------------------------
def bn_relu(x2d, scale, bias, *, out_dtype=jnp.bfloat16, tm=512):
    """relu(x * scale + bias) over a (M, C) view, tiled over rows."""
    M, C = x2d.shape
    tm_eff = min(tm, _round_up(M, 8))
    Mp = _round_up(M, tm_eff)
    pad = Mp - M
    xp = jnp.pad(x2d, ((0, pad), (0, 0))) if pad else x2d

    out = pl.pallas_call(
        _bn_relu_kernel,
        out_shape=jax.ShapeDtypeStruct((Mp, C), out_dtype),
        grid=(Mp // tm_eff,),
        in_specs=[
            pl.BlockSpec((tm_eff, C), lambda i: (i, 0)),
            pl.BlockSpec((1, C), lambda i: (0, 0)),
            pl.BlockSpec((1, C), lambda i: (0, 0)),
        ],
        out_specs=pl.BlockSpec((tm_eff, C), lambda i: (i, 0)),
        compiler_params=pltpu.CompilerParams(
            dimension_semantics=("parallel",),
            vmem_limit_bytes=VMEM_LIMIT),
    )(xp, scale.reshape(1, C).astype(jnp.float32),
      bias.reshape(1, C).astype(jnp.float32))
    return out[:M] if pad else out


def gemm_fused(a, b, *, res=None, scale=None, bias=None,
               out_dtype=jnp.float32, tm=256):
    """out = a @ b [+ res] [-> relu(scale*. + bias)], row-tiled, bf16 operands,
    f32 accumulation. Full K and N per tile (no K grid needed for 3x3 convs)."""
    M, K = a.shape
    Kb, Nc = b.shape
    assert K == Kb
    tm_eff = min(tm, _round_up(M, 8))
    Mp = _round_up(M, tm_eff)
    pad = Mp - M

    a_p = jnp.pad(a, ((0, pad), (0, 0))) if pad else a
    inputs = [a_p.astype(jnp.bfloat16), b.astype(jnp.bfloat16)]
    in_specs = [
        pl.BlockSpec((tm_eff, K), lambda i: (i, 0)),
        pl.BlockSpec((K, Nc), lambda i: (0, 0)),
    ]

    has_res = res is not None
    has_bn = scale is not None
    if has_res:
        r_p = jnp.pad(res, ((0, pad), (0, 0))) if pad else res
        inputs.append(r_p.astype(jnp.float32))
        in_specs.append(pl.BlockSpec((tm_eff, Nc), lambda i: (i, 0)))
    if has_bn:
        inputs.append(scale.reshape(1, Nc).astype(jnp.float32))
        inputs.append(bias.reshape(1, Nc).astype(jnp.float32))
        in_specs.append(pl.BlockSpec((1, Nc), lambda i: (0, 0)))
        in_specs.append(pl.BlockSpec((1, Nc), lambda i: (0, 0)))

    out = pl.pallas_call(
        _make_gemm_kernel(has_res, has_bn),
        out_shape=jax.ShapeDtypeStruct((Mp, Nc), out_dtype),
        grid=(Mp // tm_eff,),
        in_specs=in_specs,
        out_specs=pl.BlockSpec((tm_eff, Nc), lambda i: (i, 0)),
        compiler_params=pltpu.CompilerParams(
            dimension_semantics=("parallel",),
            vmem_limit_bytes=VMEM_LIMIT),
    )(*inputs)
    return out[:M] if pad else out


# ---------------------------------------------------------------------------
# Plain-JAX glue
# ---------------------------------------------------------------------------
def _bn_fold(gamma, beta, mean, var):
    # Inference-mode BatchNorm folded into per-channel scale/bias.
    scale = gamma / jnp.sqrt(var + EPS)
    bias = beta - mean * scale
    return scale, bias


def _im2col_3x3(x_nhwc, stride):
    # x: (N, H, W, C) -> patches (N*Ho*Wo, 9*C), column order (kh, kw, c).
    N, H, W, C = x_nhwc.shape
    xp = jnp.pad(x_nhwc, ((0, 0), (1, 1), (1, 1), (0, 0)))
    Ho = (H + 2 - 3) // stride + 1
    Wo = (W + 2 - 3) // stride + 1
    cols = []
    for kh in range(3):
        for kw in range(3):
            patch = xp[:,
                       kh:kh + stride * (Ho - 1) + 1:stride,
                       kw:kw + stride * (Wo - 1) + 1:stride, :]
            cols.append(patch.reshape(N * Ho * Wo, C))
    return jnp.concatenate(cols, axis=-1), Ho, Wo


def preact_block_forward(x_nchw, params, stride):
    """PreActBlock forward. x: (N, Cin, H, W) f32 -> (N, Cout, Ho, Wo) f32."""
    N, Cin, H, W = x_nchw.shape
    Cout = params["conv1_w"].shape[0]
    x = jnp.transpose(x_nchw, (0, 2, 3, 1))  # NHWC

    # a1 = relu(bn1(x))   (needed by both conv1 and the conv-shortcut)
    s1, b1 = _bn_fold(*params["bn1"])
    a1 = bn_relu(x.reshape(-1, Cin), s1, b1).reshape(N, H, W, Cin)

    # shortcut
    has_shortcut = (stride != 1) or (Cin != Cout)
    if has_shortcut:
        a1_s = a1[:, ::stride, ::stride, :]             # 1x1 stride-s conv
        w_sc = params["shortcut_w"].reshape(Cout, Cin).T  # (Cin, Cout)
        shortcut = gemm_fused(a1_s.reshape(-1, Cin), w_sc,
                              out_dtype=jnp.float32)    # (M2, Cout), no residual
    else:
        shortcut = x.reshape(-1, Cin)                    # identity: raw x, f32

    # conv1 (3x3, stride, pad=1) with fused relu(bn2(.)) epilogue -> a2 (bf16)
    s2, b2 = _bn_fold(*params["bn2"])
    p1, Ho, Wo = _im2col_3x3(a1, stride)                 # bf16 patches
    w1 = params["conv1_w"].transpose(2, 3, 1, 0).reshape(9 * Cin, Cout)
    a2 = gemm_fused(p1, w1, scale=s2, bias=b2,
                    out_dtype=jnp.bfloat16).reshape(N, Ho, Wo, Cout)

    # conv2 (3x3, stride 1, pad=1) with fused residual add -> y (f32)
    p2, _, _ = _im2col_3x3(a2, 1)                        # bf16 patches
    w2 = params["conv2_w"].transpose(2, 3, 1, 0).reshape(9 * Cout, Cout)
    y = gemm_fused(p2, w2, res=shortcut, out_dtype=jnp.float32)

    return jnp.transpose(y.reshape(N, Ho, Wo, Cout), (0, 3, 1, 2))  # NCHW


# ---------------------------------------------------------------------------
# Pure-JAX reference (for verification)
# ---------------------------------------------------------------------------
def _ref_forward(x, params, stride):
    def bn(v, p):
        g, be, m, s = (t[None, :, None, None] for t in p)
        return (v - m) / jnp.sqrt(s + EPS) * g + be

    def conv(v, w, st, pad):
        return jax.lax.conv_general_dilated(
            v, w, (st, st), ((pad, pad), (pad, pad)),
            dimension_numbers=("NCHW", "OIHW", "NCHW"))

    Cin, Cout = x.shape[1], params["conv1_w"].shape[0]
    out = jax.nn.relu(bn(x, params["bn1"]))
    if stride != 1 or Cin != Cout:
        shortcut = conv(out, params["shortcut_w"], stride, 0)
    else:
        shortcut = x
    out = conv(out, params["conv1_w"], stride, 1)
    out = conv(jax.nn.relu(bn(out, params["bn2"])), params["conv2_w"], 1, 1)
    return out + shortcut


# ---------------------------------------------------------------------------
if __name__ == "__main__":
    key = jax.random.PRNGKey(0)

    def make_params(key, Cin, Cout):
        ks = jax.random.split(key, 11)
        return {
            # Inference-mode BN (running stats); deterministic non-trivial values.
            "bn1": (
                1.0 + 0.1 * jax.random.normal(ks[0], (Cin,), jnp.float32),
                0.1 * jax.random.normal(ks[1], (Cin,), jnp.float32),
                0.1 * jax.random.normal(ks[2], (Cin,), jnp.float32),
                0.5 + jnp.abs(jax.random.normal(ks[3], (Cin,), jnp.float32)),
            ),
            "bn2": (
                1.0 + 0.1 * jax.random.normal(ks[4], (Cout,), jnp.float32),
                0.1 * jax.random.normal(ks[5], (Cout,), jnp.float32),
                0.1 * jax.random.normal(ks[6], (Cout,), jnp.float32),
                0.5 + jnp.abs(jax.random.normal(ks[7], (Cout,), jnp.float32)),
            ),
            "conv1_w": 0.1 * jax.random.normal(ks[8], (Cout, Cin, 3, 3), jnp.float32),
            "conv2_w": 0.1 * jax.random.normal(ks[9], (Cout, Cout, 3, 3), jnp.float32),
            "shortcut_w": 0.1 * jax.random.normal(ks[10], (Cout, Cin, 1, 1), jnp.float32),
        }

    fwd = jax.jit(preact_block_forward, static_argnums=(2,))

    # Config 1: stride=2, Cin != Cout  -> exercises the conv-shortcut branch.
    k0, k1, k2, k3 = jax.random.split(key, 4)
    N, Cin, H, W, Cout, stride = 2, 4, 16, 16, 8, 2
    x = jax.random.normal(k0, (N, Cin, H, W), jnp.float32)
    params = make_params(k1, Cin, Cout)
    out = jax.block_until_ready(fwd(x, params, stride))
    ref = jax.block_until_ready(_ref_forward(x, params, stride))
    assert out.shape == (N, Cout, H // stride, W // stride), out.shape
    assert jnp.allclose(out, ref, atol=5e-2, rtol=5e-2), float(
        jnp.max(jnp.abs(out - ref)))

    # Config 2: stride=1, Cin == Cout -> exercises the identity-shortcut branch
    # (and multi-tile row grids in the conv GEMMs).
    N2, C2 = 2, 8
    x2 = jax.random.normal(k2, (N2, C2, H, W), jnp.float32)
    params2 = make_params(k3, C2, C2)
    out2 = jax.block_until_ready(fwd(x2, params2, 1))
    ref2 = jax.block_until_ready(_ref_forward(x2, params2, 1))
    assert out2.shape == (N2, C2, H, W), out2.shape
    assert jnp.allclose(out2, ref2, atol=5e-2, rtol=5e-2), float(
        jnp.max(jnp.abs(out2 - ref2)))

    # TODO(synk): PyTorch BatchNorm2d in train mode would use batch statistics;
    # here BN uses (deterministic) running stats, i.e. inference-mode semantics.
    print("KERNEL_OK")
</pallas_src>

<mosaic_0001>
module attributes {stable_mosaic.version = 11 : i64} {
  func.func @_bn_relu_kernel(%arg0: i32, %arg1: memref<512x4xf32, #tpu.memory_space<vmem>>, %arg2: memref<1x4xf32, #tpu.memory_space<vmem>>, %arg3: memref<1x4xf32, #tpu.memory_space<vmem>>, %arg4: memref<512x4xbf16, #tpu.memory_space<vmem>>) attributes {dimension_semantics = [#tpu.dimension_semantics<parallel>], iteration_bounds = array<i64: 1>, scalar_prefetch = 0 : i64, scratch_operands = 0 : i64, tpu.core_type = #tpu.core_type<tc>, window_params = [{transform_indices = @transform_0, window_bounds = array<i64: 512, 4>}, {pipeline_mode = #tpu.pipeline_mode<synchronous>, transform_indices = @transform_1, window_bounds = array<i64: 1, 4>}, {pipeline_mode = #tpu.pipeline_mode<synchronous>, transform_indices = @transform_2, window_bounds = array<i64: 1, 4>}, {transform_indices = @transform_3, window_bounds = array<i64: 512, 4>}]} {
    %c0 = arith.constant 0 : index
    %c0_0 = arith.constant 0 : index
    %0 = vector.load %arg1[%c0, %c0_0] : memref<512x4xf32, #tpu.memory_space<vmem>>, vector<512x4xf32>
    %c0_1 = arith.constant 0 : index
    %c0_2 = arith.constant 0 : index
    %1 = vector.load %arg2[%c0_1, %c0_2] : memref<1x4xf32, #tpu.memory_space<vmem>>, vector<1x4xf32>
    %2 = vector.broadcast %1 : vector<1x4xf32> to vector<512x4xf32>
    %3 = arith.mulf %0, %2 : vector<512x4xf32>
    %c0_3 = arith.constant 0 : index
    %c0_4 = arith.constant 0 : index
    %4 = vector.load %arg3[%c0_3, %c0_4] : memref<1x4xf32, #tpu.memory_space<vmem>>, vector<1x4xf32>
    %5 = vector.broadcast %4 : vector<1x4xf32> to vector<512x4xf32>
    %6 = arith.addf %3, %5 : vector<512x4xf32>
    %cst = arith.constant 0.000000e+00 : f32
    %7 = vector.broadcast %cst : f32 to vector<512x4xf32>
    %8 = arith.maximumf %6, %7 : vector<512x4xf32>
    %9 = arith.truncf %8 : vector<512x4xf32> to vector<512x4xbf16>
    %c0_5 = arith.constant 0 : index
    %c0_6 = arith.constant 0 : index
    %10 = vector.load %arg4[%c0_5, %c0_6] : memref<512x4xbf16, #tpu.memory_space<vmem>>, vector<512x4xbf16>
    tpu.vector_store %arg4[%c0_5, %c0_6], %9 {strides = array<i32>} : memref<512x4xbf16, #tpu.memory_space<vmem>>, vector<512x4xbf16>,
    return
  }
  func.func @transform_0(%arg0: i32) -> (i32, i32) {
    %c0_i32 = arith.constant 0 : i32
    %c0_i32_0 = arith.constant 0 : i32
    return %arg0, %c0_i32 : i32, i32
  }
  func.func @transform_1(%arg0: i32) -> (i32, i32) {
    %c0_i32 = arith.constant 0 : i32
    %c0_i32_0 = arith.constant 0 : i32
    %c0_i32_1 = arith.constant 0 : i32
    return %c0_i32, %c0_i32_0 : i32, i32
  }
  func.func @transform_2(%arg0: i32) -> (i32, i32) {
    %c0_i32 = arith.constant 0 : i32
    %c0_i32_0 = arith.constant 0 : i32
    %c0_i32_1 = arith.constant 0 : i32
    return %c0_i32, %c0_i32_0 : i32, i32
  }
  func.func @transform_3(%arg0: i32) -> (i32, i32) {
    %c0_i32 = arith.constant 0 : i32
    %c0_i32_0 = arith.constant 0 : i32
    return %arg0, %c0_i32 : i32, i32
  }
}

module attributes {stable_mosaic.version = 11 : i64} {
  func.func @kernel(%arg0: i32, %arg1: memref<128x4xbf16, #tpu.memory_space<vmem>>, %arg2: memref<4x8xbf16, #tpu.memory_space<vmem>>, %arg3: memref<128x8xf32, #tpu.memory_space<vmem>>) attributes {dimension_semantics = [#tpu.dimension_semantics<parallel>], iteration_bounds = array<i64: 1>, scalar_prefetch = 0 : i64, scratch_operands = 0 : i64, tpu.core_type = #tpu.core_type<tc>, window_params = [{transform_indices = @transform_0, window_bounds = array<i64: 128, 4>}, {pipeline_mode = #tpu.pipeline_mode<synchronous>, transform_indices = @transform_1, window_bounds = array<i64: 4, 8>}, {transform_indices = @transform_2, window_bounds = array<i64: 128, 8>}]} {
    %c0 = arith.constant 0 : index
    %c0_0 = arith.constant 0 : index
    %0 = vector.load %arg1[%c0, %c0_0] : memref<128x4xbf16, #tpu.memory_space<vmem>>, vector<128x4xbf16>
    %c0_1 = arith.constant 0 : index
    %c0_2 = arith.constant 0 : index
    %1 = vector.load %arg2[%c0_1, %c0_2] : memref<4x8xbf16, #tpu.memory_space<vmem>>, vector<4x8xbf16>
    %cst = arith.constant dense<0.000000e+00> : vector<128x8xf32>
    %2 = tpu.matmul %0, %1, %cst {dimension_numbers = #tpu.dot_dimension_numbers<[1], [0], [0], [1], [0, 0, 1, 1], [], []>} : vector<128x4xbf16>, vector<4x8xbf16>, vector<128x8xf32> -> vector<128x8xf32>
    %c0_3 = arith.constant 0 : index
    %c0_4 = arith.constant 0 : index
    %3 = vector.load %arg3[%c0_3, %c0_4] : memref<128x8xf32, #tpu.memory_space<vmem>>, vector<128x8xf32>
    tpu.vector_store %arg3[%c0_3, %c0_4], %2 {strides = array<i32>} : memref<128x8xf32, #tpu.memory_space<vmem>>, vector<128x8xf32>,
    return
  }
  func.func @transform_0(%arg0: i32) -> (i32, i32) {
    %c0_i32 = arith.constant 0 : i32
    %c0_i32_0 = arith.constant 0 : i32
    return %arg0, %c0_i32 : i32, i32
  }
  func.func @transform_1(%arg0: i32) -> (i32, i32) {
    %c0_i32 = arith.constant 0 : i32
    %c0_i32_0 = arith.constant 0 : i32
    %c0_i32_1 = arith.constant 0 : i32
    return %c0_i32, %c0_i32_0 : i32, i32
  }
  func.func @transform_2(%arg0: i32) -> (i32, i32) {
    %c0_i32 = arith.constant 0 : i32
    %c0_i32_0 = arith.constant 0 : i32
    return %arg0, %c0_i32 : i32, i32
  }
}

module attributes {stable_mosaic.version = 11 : i64} {
  func.func @kernel(%arg0: i32, %arg1: memref<128x36xbf16, #tpu.memory_space<vmem>>, %arg2: memref<36x8xbf16, #tpu.memory_space<vmem>>, %arg3: memref<1x8xf32, #tpu.memory_space<vmem>>, %arg4: memref<1x8xf32, #tpu.memory_space<vmem>>, %arg5: memref<128x8xbf16, #tpu.memory_space<vmem>>) attributes {dimension_semantics = [#tpu.dimension_semantics<parallel>], iteration_bounds = array<i64: 1>, scalar_prefetch = 0 : i64, scratch_operands = 0 : i64, tpu.core_type = #tpu.core_type<tc>, window_params = [{transform_indices = @transform_0, window_bounds = array<i64: 128, 36>}, {pipeline_mode = #tpu.pipeline_mode<synchronous>, transform_indices = @transform_1, window_bounds = array<i64: 36, 8>}, {pipeline_mode = #tpu.pipeline_mode<synchronous>, transform_indices = @transform_2, window_bounds = array<i64: 1, 8>}, {pipeline_mode = #tpu.pipeline_mode<synchronous>, transform_indices = @transform_3, window_bounds = array<i64: 1, 8>}, {transform_indices = @transform_4, window_bounds = array<i64: 128, 8>}]} {
    %c0 = arith.constant 0 : index
    %c0_0 = arith.constant 0 : index
    %0 = vector.load %arg1[%c0, %c0_0] : memref<128x36xbf16, #tpu.memory_space<vmem>>, vector<128x36xbf16>
    %c0_1 = arith.constant 0 : index
    %c0_2 = arith.constant 0 : index
    %1 = vector.load %arg2[%c0_1, %c0_2] : memref<36x8xbf16, #tpu.memory_space<vmem>>, vector<36x8xbf16>
    %cst = arith.constant dense<0.000000e+00> : vector<128x8xf32>
    %2 = tpu.matmul %0, %1, %cst {dimension_numbers = #tpu.dot_dimension_numbers<[1], [0], [0], [1], [0, 0, 1, 1], [], []>} : vector<128x36xbf16>, vector<36x8xbf16>, vector<128x8xf32> -> vector<128x8xf32>
    %c0_3 = arith.constant 0 : index
    %c0_4 = arith.constant 0 : index
    %3 = vector.load %arg3[%c0_3, %c0_4] : memref<1x8xf32, #tpu.memory_space<vmem>>, vector<1x8xf32>
    %4 = vector.broadcast %3 : vector<1x8xf32> to vector<128x8xf32>
    %5 = arith.mulf %2, %4 : vector<128x8xf32>
    %c0_5 = arith.constant 0 : index
    %c0_6 = arith.constant 0 : index
    %6 = vector.load %arg4[%c0_5, %c0_6] : memref<1x8xf32, #tpu.memory_space<vmem>>, vector<1x8xf32>
    %7 = vector.broadcast %6 : vector<1x8xf32> to vector<128x8xf32>
    %8 = arith.addf %5, %7 : vector<128x8xf32>
    %cst_7 = arith.constant 0.000000e+00 : f32
    %9 = vector.broadcast %cst_7 : f32 to vector<128x8xf32>
    %10 = arith.maximumf %8, %9 : vector<128x8xf32>
    %11 = arith.truncf %10 : vector<128x8xf32> to vector<128x8xbf16>
    %c0_8 = arith.constant 0 : index
    %c0_9 = arith.constant 0 : index
    %12 = vector.load %arg5[%c0_8, %c0_9] : memref<128x8xbf16, #tpu.memory_space<vmem>>, vector<128x8xbf16>
    tpu.vector_store %arg5[%c0_8, %c0_9], %11 {strides = array<i32>} : memref<128x8xbf16, #tpu.memory_space<vmem>>, vector<128x8xbf16>,
    return
  }
  func.func @transform_0(%arg0: i32) -> (i32, i32) {
    %c0_i32 = arith.constant 0 : i32
    %c0_i32_0 = arith.constant 0 : i32
    return %arg0, %c0_i32 : i32, i32
  }
  func.func @transform_1(%arg0: i32) -> (i32, i32) {
    %c0_i32 = arith.constant 0 : i32
    %c0_i32_0 = arith.constant 0 : i32
    %c0_i32_1 = arith.constant 0 : i32
    return %c0_i32, %c0_i32_0 : i32, i32
  }
  func.func @transform_2(%arg0: i32) -> (i32, i32) {
    %c0_i32 = arith.constant 0 : i32
    %c0_i32_0 = arith.constant 0 : i32
    %c0_i32_1 = arith.constant 0 : i32
    return %c0_i32, %c0_i32_0 : i32, i32
  }
  func.func @transform_3(%arg0: i32) -> (i32, i32) {
    %c0_i32 = arith.constant 0 : i32
    %c0_i32_0 = arith.constant 0 : i32
    %c0_i32_1 = arith.constant 0 : i32
    return %c0_i32, %c0_i32_0 : i32, i32
  }
  func.func @transform_4(%arg0: i32) -> (i32, i32) {
    %c0_i32 = arith.constant 0 : i32
    %c0_i32_0 = arith.constant 0 : i32
    return %arg0, %c0_i32 : i32, i32
  }
}

module attributes {stable_mosaic.version = 11 : i64} {
  func.func @kernel(%arg0: i32, %arg1: memref<128x72xbf16, #tpu.memory_space<vmem>>, %arg2: memref<72x8xbf16, #tpu.memory_space<vmem>>, %arg3: memref<128x8xf32, #tpu.memory_space<vmem>>, %arg4: memref<128x8xf32, #tpu.memory_space<vmem>>) attributes {dimension_semantics = [#tpu.dimension_semantics<parallel>], iteration_bounds = array<i64: 1>, scalar_prefetch = 0 : i64, scratch_operands = 0 : i64, tpu.core_type = #tpu.core_type<tc>, window_params = [{transform_indices = @transform_0, window_bounds = array<i64: 128, 72>}, {pipeline_mode = #tpu.pipeline_mode<synchronous>, transform_indices = @transform_1, window_bounds = array<i64: 72, 8>}, {transform_indices = @transform_2, window_bounds = array<i64: 128, 8>}, {transform_indices = @transform_3, window_bounds = array<i64: 128, 8>}]} {
    %c0 = arith.constant 0 : index
    %c0_0 = arith.constant 0 : index
    %0 = vector.load %arg1[%c0, %c0_0] : memref<128x72xbf16, #tpu.memory_space<vmem>>, vector<128x72xbf16>
    %c0_1 = arith.constant 0 : index
    %c0_2 = arith.constant 0 : index
    %1 = vector.load %arg2[%c0_1, %c0_2] : memref<72x8xbf16, #tpu.memory_space<vmem>>, vector<72x8xbf16>
    %cst = arith.constant dense<0.000000e+00> : vector<128x8xf32>
    %2 = tpu.matmul %0, %1, %cst {dimension_numbers = #tpu.dot_dimension_numbers<[1], [0], [0], [1], [0, 0, 1, 1], [], []>} : vector<128x72xbf16>, vector<72x8xbf16>, vector<128x8xf32> -> vector<128x8xf32>
    %c0_3 = arith.constant 0 : index
    %c0_4 = arith.constant 0 : index
    %3 = vector.load %arg3[%c0_3, %c0_4] : memref<128x8xf32, #tpu.memory_space<vmem>>, vector<128x8xf32>
    %4 = arith.addf %2, %3 : vector<128x8xf32>
    %c0_5 = arith.constant 0 : index
    %c0_6 = arith.constant 0 : index
    %5 = vector.load %arg4[%c0_5, %c0_6] : memref<128x8xf32, #tpu.memory_space<vmem>>, vector<128x8xf32>
    tpu.vector_store %arg4[%c0_5, %c0_6], %4 {strides = array<i32>} : memref<128x8xf32, #tpu.memory_space<vmem>>, vector<128x8xf32>,
    return
  }
  func.func @transform_0(%arg0: i32) -> (i32, i32) {
    %c0_i32 = arith.constant 0 : i32
    %c0_i32_0 = arith.constant 0 : i32
    return %arg0, %c0_i32 : i32, i32
  }
  func.func @transform_1(%arg0: i32) -> (i32, i32) {
    %c0_i32 = arith.constant 0 : i32
    %c0_i32_0 = arith.constant 0 : i32
    %c0_i32_1 = arith.constant 0 : i32
    return %c0_i32, %c0_i32_0 : i32, i32
  }
  func.func @transform_2(%arg0: i32) -> (i32, i32) {
    %c0_i32 = arith.constant 0 : i32
    %c0_i32_0 = arith.constant 0 : i32
    return %arg0, %c0_i32 : i32, i32
  }
  func.func @transform_3(%arg0: i32) -> (i32, i32) {
    %c0_i32 = arith.constant 0 : i32
    %c0_i32_0 = arith.constant 0 : i32
    return %arg0, %c0_i32 : i32, i32
  }
}

</mosaic_0001>

<bundles_post_ra>
// kernel: preact_block_forward.5
= control target key start
LH: loop header
LB: loop body
LE: loop exit
PB: predicated region body
PF: predicated region fallthrough
CT: control target
= control target key end

     0   :  { %vm94_vm0 = vcmask 1041408   ;;  %vm69_vm1 = vcmask 31744   ;;  %vm195_vm2 = vcmask 64512   ;;  %s385_s1 = inlined_call_operand.vmem [shape: bf16[4,8], index: 1, kind: input, shape index: {}]   ;;  %s386_s0 = inlined_call_operand.vmem [shape: bf16[128,4], index: 0, kind: input, shape index: {}]   ;;  %s387_s2 = inlined_call_operand.vmem [shape: f32[128,8], index: 2, kind: output, shape index: {}]  }
   0x1   :  { %v28_v0 = vld [vmem:[%s385_s1] sm:$0x3]  ;;  %v265_v4 = vld [vmem:[%s386_s0 + $0x8] sm:$0xff]   ;;  %v267_v6 = vld [vmem:[%s386_s0 + $0x10] sm:$0xff]  }
   0x2   :  { %261 = vmatprep.subr.msk.bf16.mxu0 %vm94_vm0, %v28_v0  ;;  %262 = vmatprep.subr.msk.bf16.mxu1 %vm94_vm0, %v28_v0  ;;  %v96_v1 = vsel %vm94_vm0, %v28_v0, 0  ;;  %v263_v2 = vld [vmem:[%s386_s0] sm:$0xff]   ;;  %v266_v5 = vld [vmem:[%s386_s0 + $0x28] sm:$0xff]   ;;  %v268_v7 = vld [vmem:[%s386_s0 + $0x30] sm:$0xff]  }
   0x3   :  { %242 = vmatpush3.bf16.msra.mxu0 %v96_v1  ;;  %260 = vmatpush3.bf16.msra.mxu1 %v96_v1  ;;  %v264_v3 = vld [vmem:[%s386_s0 + $0x20] sm:$0xff]   ;;  %v269_v8 = vld [vmem:[%s386_s0 + $0x18] sm:$0xff]  }
   0x4   :  { %243 = vmatprep.mubr.msk.bf16.mxu0 %vm69_vm1, %v263_v2  ;;  %251 = vmatprep.mubr.msk.bf16.mxu1 %vm69_vm1, %v264_v3  ;;  %v270_v9 = vld [vmem:[%s386_s0 + $0x38] sm:$0xff]  }
   0x6   :  { %244 = vmatmul.mubr.msk.bf16.vlgmr.msra.gmra.mrb[0].mxu0 %vm69_vm1, %v265_v4  ;;  %252 = vmatmul.mubr.msk.bf16.vlgmr.msra.gmra.mrb[0].mxu1 %vm69_vm1, %v266_v5 }
   0x7   :  { %247 = vmatprep.mubr.msk.bf16.mxu0 %vm69_vm1, %v267_v6  ;;  %255 = vmatprep.mubr.msk.bf16.mxu1 %vm69_vm1, %v268_v7 }
   0xe   :  { %248 = vmatmul.mubr.msk.bf16.gmra.mrb[4].mxu0 %vm69_vm1, %v269_v8  ;;  %256 = vmatmul.mubr.msk.bf16.gmra.mrb[4].mxu1 %vm69_vm1, %v270_v9 }
  0xd9   :  { %v245_v10 = vpop.f32.mrb[0].mxu0  ;;  %v253_v11 = vpop.f32.mrb[0].mxu1 }
  0xda   :  { %198 = vst.msk [vmem:[%s387_s2 + $0x10] sm:$0xff] %vm195_vm2, %v245_v10  ;;  %v132_v12 = vpop.f32.mrb[1].mxu0  ;;  %206 = vst.msk [vmem:[%s387_s2 + $0x50] sm:$0xff] %vm195_vm2, %v253_v11  ;;  %v164_v13 = vpop.f32.mrb[1].mxu1 }
  0xdb   :  { %196 = vst.msk [vmem:[%s387_s2] sm:$0xff] %vm195_vm2, %v132_v12  ;;  %v246_v14 = vpop.f32.mrb[2].mxu0  ;;  %204 = vst.msk [vmem:[%s387_s2 + $0x40] sm:$0xff] %vm195_vm2, %v164_v13  ;;  %v254_v15 = vpop.f32.mrb[2].mxu1 }
  0xdc   :  { %199 = vst.msk [vmem:[%s387_s2 + $0x18] sm:$0xff] %vm195_vm2, %v246_v14  ;;  %v135_v16 = vpop.f32.mrb[3].mxu0  ;;  %207 = vst.msk [vmem:[%s387_s2 + $0x58] sm:$0xff] %vm195_vm2, %v254_v15  ;;  %v167_v17 = vpop.f32.mrb[3].mxu1 }
  0xdd   :  { %197 = vst.msk [vmem:[%s387_s2 + $0x8] sm:$0xff] %vm195_vm2, %v135_v16  ;;  %205 = vst.msk [vmem:[%s387_s2 + $0x48] sm:$0xff] %vm195_vm2, %v167_v17 }
  0xe1   :  { %v249_v18 = vpop.f32.mrb[4].mxu0  ;;  %v257_v19 = vpop.f32.mrb[4].mxu1 }
  0xe2   :  { %202 = vst.msk [vmem:[%s387_s2 + $0x30] sm:$0xff] %vm195_vm2, %v249_v18  ;;  %v148_v20 = vpop.f32.mrb[5].mxu0  ;;  %210 = vst.msk [vmem:[%s387_s2 + $0x70] sm:$0xff] %vm195_vm2, %v257_v19  ;;  %v180_v21 = vpop.f32.mrb[5].mxu1 }
  0xe3   :  { %200 = vst.msk [vmem:[%s387_s2 + $0x20] sm:$0xff] %vm195_vm2, %v148_v20  ;;  %v250_v22 = vpop.f32.mrb[6].mxu0  ;;  %208 = vst.msk [vmem:[%s387_s2 + $0x60] sm:$0xff] %vm195_vm2, %v180_v21  ;;  %v258_v23 = vpop.f32.mrb[6].mxu1 }
  0xe4   :  { %203 = vst.msk [vmem:[%s387_s2 + $0x38] sm:$0xff] %vm195_vm2, %v250_v22  ;;  %v151_v24 = vpop.f32.mrb[7].mxu0  ;;  %211 = vst.msk [vmem:[%s387_s2 + $0x78] sm:$0xff] %vm195_vm2, %v258_v23  ;;  %v183_v25 = vpop.f32.mrb[7].mxu1 }
  0xe5   :  { %201 = vst.msk [vmem:[%s387_s2 + $0x28] sm:$0xff] %vm195_vm2, %v151_v24  ;;  %209 = vst.msk [vmem:[%s387_s2 + $0x68] sm:$0xff] %vm195_vm2, %v183_v25 }

// kernel: preact_block_forward.4
= control target key start
LH: loop header
LB: loop body
LE: loop exit
PB: predicated region body
PF: predicated region fallthrough
CT: control target
= control target key end

     0   :  { %vm540_vm0 = vcmask 27648   ;;  %s1345_s0 = inlined_call_operand.vmem [shape: f32[512,4], index: 0, kind: input, shape index: {}]   ;;  %s1346_s1 = inlined_call_operand.vmem [shape: f32[1,4], index: 1, kind: input, shape index: {}]   ;;  %s1347_s2 = inlined_call_operand.vmem [shape: f32[1,4], index: 2, kind: input, shape index: {}]   ;;  %s1348_s3 = inlined_call_operand.vmem [shape: bf16[512,4], index: 3, kind: output, shape index: {}]  }
   0x1   :  { %v14_v0 = vld [vmem:[%s1345_s0] sm:$0xff]  ;;  %v15_v4 = vld [vmem:[%s1345_s0 + $0x8] sm:$0xff]  ;;  %v16_v5 = vld [vmem:[%s1345_s0 + $0x10] sm:$0xff] }
   0x2   :  { %v765_v1 = vld [vmem:[%s1346_s1] ss:$0 sm:$0xff]  ;;  %v17_v6 = vld [vmem:[%s1345_s0 + $0x18] sm:$0xff]  ;;  %v19_v11 = vld [vmem:[%s1345_s0 + $0x28] sm:$0xff] }
   0x3   :  { %v770_v2 = vld [vmem:[%s1347_s2] ss:$0 sm:$0xff]  ;;  %v85_v3 = vmul.f32 %v765_v1, %v14_v0  ;;  %v86_v7 = vmul.f32 %v765_v1, %v15_v4  ;;  %v87_v8 = vmul.f32 %v765_v1, %v16_v5  ;;  %v88_v9 = vmul.f32 %v765_v1, %v17_v6  ;;  %v20_v12 = vld [vmem:[%s1345_s0 + $0x30] sm:$0xff]  ;;  %v21_v17 = vld [vmem:[%s1345_s0 + $0x38] sm:$0xff] }
   0x4   :  { %v18_v10 = vld [vmem:[%s1345_s0 + $0x20] sm:$0xff]  ;;  %v90_v15 = vmul.f32 %v765_v1, %v19_v11  ;;  %v91_v16 = vmul.f32 %v765_v1, %v20_v12  ;;  %v92_v21 = vmul.f32 %v765_v1, %v21_v17  ;;  %v23_v35 = vld [vmem:[%s1345_s0 + $0x48] sm:$0xff]  ;;  %v24_v36 = vld [vmem:[%s1345_s0 + $0x50] sm:$0xff] }
   0x5   :  { %v156_v13 = vadd.f32 %v770_v2, %v85_v3  ;;  %v89_v14 = vmul.f32 %v765_v1, %v18_v10  ;;  %v157_v18 = vadd.f32 %v770_v2, %v86_v7  ;;  %v158_v19 = vadd.f32 %v770_v2, %v87_v8  ;;  %v22_v30 = vld [vmem:[%s1345_s0 + $0x40] sm:$0xff]  ;;  %v25_v37 = vld [vmem:[%s1345_s0 + $0x58] sm:$0xff]  ;;  %v27_v43 = vld [vmem:[%s1345_s0 + $0x68] sm:$0xff] }
   0x6   :  { %v159_v20 = vadd.f32 %v770_v2, %v88_v9  ;;  %v161_v24 = vadd.f32 %v770_v2, %v90_v15  ;;  %v162_v25 = vadd.f32 %v770_v2, %v91_v16  ;;  %v163_v29 = vadd.f32 %v770_v2, %v92_v21  ;;  %v26_v42 = vld [vmem:[%s1345_s0 + $0x60] sm:$0xff]  ;;  %v28_v44 = vld [vmem:[%s1345_s0 + $0x70] sm:$0xff]  ;;  %v29_v49 = vld [vmem:[%s1345_s0 + $0x78] sm:$0xff] }
   0x7   :  { %v220_v22 = vmax.f32 %v156_v13, 0.0  ;;  %v160_v23 = vadd.f32 %v770_v2, %v89_v14  ;;  %v221_v26 = vmax.f32 %v157_v18, 0.0  ;;  %v222_v27 = vmax.f32 %v158_v19, 0.0  ;;  %v30_v8 = vld [vmem:[%s1345_s0 + $0x80] sm:$0xff]  ;;  %v31_v13 = vld [vmem:[%s1345_s0 + $0x88] sm:$0xff]  ;;  %v32_v14 = vld [vmem:[%s1345_s0 + $0x90] sm:$0xff] }
   0x8   :  { %v223_v28 = vmax.f32 %v159_v20, 0.0  ;;  %v225_v33 = vmax.f32 %v161_v24, 0.0  ;;  %v226_v34 = vmax.f32 %v162_v25, 0.0  ;;  %v227_v41 = vmax.f32 %v163_v29, 0.0  ;;  %v33_v15 = vld [vmem:[%s1345_s0 + $0x98] sm:$0xff]  ;;  %v34_v20 = vld [vmem:[%s1345_s0 + $0xa0] sm:$0xff] }
   0x9   :  { %v675_v31 = vpack.c.bf16 %v220_v22, %v220_v22  ;;  %v224_v32 = vmax.f32 %v160_v23, 0.0  ;;  %v676_v38 = vpack.c.bf16 %v221_v26, %v221_v26  ;;  %v677_v39 = vpack.c.bf16 %v222_v27, %v222_v27  ;;  %v35_v21 = vld [vmem:[%s1345_s0 + $0xa8] sm:$0xff]  ;;  %v36_v22 = vld [vmem:[%s1345_s0 + $0xb0] sm:$0xff]  ;;  %v37_v27 = vld [vmem:[%s1345_s0 + $0xb8] sm:$0xff] }
   0xa   :  { %v678_v40 = vpack.c.bf16 %v223_v28, %v223_v28  ;;  %v680_v46 = vpack.c.bf16 %v225_v33, %v225_v33  ;;  %v681_v47 = vpack.c.bf16 %v226_v34, %v226_v34  ;;  %v93_v48 = vmul.f32 %v765_v1, %v22_v30 }
   0xb   :  { %541 = vst.msk [vmem:[%s1348_s3] sm:$0xf] %vm540_vm0, %v675_v31  ;;  %v679_v45 = vpack.c.bf16 %v224_v32, %v224_v32  ;;  %542 = vst.msk [vmem:[%s1348_s3 + $0x4] sm:$0xf] %vm540_vm0, %v676_v38  ;;  %v682_v50 = vpack.c.bf16 %v227_v41, %v227_v41  ;;  %v94_v51 = vmul.f32 %v765_v1, %v23_v35 }
   0xc   :  { %543 = vst.msk [vmem:[%s1348_s3 + $0x8] sm:$0xf] %vm540_vm0, %v677_v39  ;;  %544 = vst.msk [vmem:[%s1348_s3 + $0xc] sm:$0xf] %vm540_vm0, %v678_v40  ;;  %v95_v52 = vmul.f32 %v765_v1, %v24_v36  ;;  %v96_v53 = vmul.f32 %v765_v1, %v25_v37  ;;  %v164_v54 = vadd.f32 %v770_v2, %v93_v48  ;;  %v38_v48 = vld [vmem:[%s1345_s0 + $0xc0] sm:$0xff] }
   0xd   :  { %545 = vst.msk [vmem:[%s1348_s3 + $0x10] sm:$0xf] %vm540_vm0, %v679_v45  ;;  %546 = vst.msk [vmem:[%s1348_s3 + $0x14] sm:$0xf] %vm540_vm0, %v680_v46  ;;  %v97_v55 = vmul.f32 %v765_v1, %v26_v42  ;;  %v98_v56 = vmul.f32 %v765_v1, %v27_v43  ;;  %v99_v57 = vmul.f32 %v765_v1, %v28_v44 }
   0xe   :  { %547 = vst.msk [vmem:[%s1348_s3 + $0x18] sm:$0xf] %vm540_vm0, %v681_v47  ;;  %548 = vst.msk [vmem:[%s1348_s3 + $0x1c] sm:$0xf] %vm540_vm0, %v682_v50  ;;  %v165_v58 = vadd.f32 %v770_v2, %v94_v51  ;;  %v166_v59 = vadd.f32 %v770_v2, %v95_v52  ;;  %v167_v60 = vadd.f32 %v770_v2, %v96_v53  ;;  %v228_v62 = vmax.f32 %v164_v54, 0.0  ;;  %v39_v53 = vld [vmem:[%s1345_s0 + $0xc8] sm:$0xff] }
   0xf   :  { %v100_v61 = vmul.f32 %v765_v1, %v29_v49  ;;  %v168_v63 = vadd.f32 %v770_v2, %v97_v55  ;;  %v169_v0 = vadd.f32 %v770_v2, %v98_v56  ;;  %v170_v3 = vadd.f32 %v770_v2, %v99_v57  ;;  %v40_v54 = vld [vmem:[%s1345_s0 + $0xd0] sm:$0xff]  ;;  %v41_v55 = vld [vmem:[%s1345_s0 + $0xd8] sm:$0xff] }
  0x10   :  { %v229_v4 = vmax.f32 %v165_v58, 0.0  ;;  %v230_v5 = vmax.f32 %v166_v59, 0.0  ;;  %v231_v6 = vmax.f32 %v167_v60, 0.0  ;;  %v683_v9 = vpack.c.bf16 %v228_v62, %v228_v62  ;;  %v42_v60 = vld [vmem:[%s1345_s0 + $0xe0] sm:$0xff]  ;;  %v44_v62 = vld [vmem:[%s1345_s0 + $0xf0] sm:$0xff] }
  0x11   :  { %v171_v7 = vadd.f32 %v770_v2, %v100_v61  ;;  %v232_v10 = vmax.f32 %v168_v63, 0.0  ;;  %v233_v11 = vmax.f32 %v169_v0, 0.0  ;;  %v234_v12 = vmax.f32 %v170_v3, 0.0  ;;  %v43_v61 = vld [vmem:[%s1345_s0 + $0xe8] sm:$0xff] }
  0x12   :  { %v684_v16 = vpack.c.bf16 %v229_v4, %v229_v4  ;;  %v685_v17 = vpack.c.bf16 %v230_v5, %v230_v5  ;;  %v686_v18 = vpack.c.bf16 %v231_v6, %v231_v6  ;;  %549 = vst.msk [vmem:[%s1348_s3 + $0x20] sm:$0xf] %vm540_vm0, %v683_v9  ;;  %v101_v26 = vmul.f32 %v765_v1, %v30_v8  ;;  %v45_v5 = vld [vmem:[%s1345_s0 + $0xf8] sm:$0xff] }
  0x13   :  { %v235_v19 = vmax.f32 %v171_v7, 0.0  ;;  %v687_v23 = vpack.c.bf16 %v232_v10, %v232_v10  ;;  %v688_v24 = vpack.c.bf16 %v233_v11, %v233_v11  ;;  %v689_v25 = vpack.c.bf16 %v234_v12, %v234_v12 }
  0x14   :  { %550 = vst.msk [vmem:[%s1348_s3 + $0x24] sm:$0xf] %vm540_vm0, %v684_v16  ;;  %551 = vst.msk [vmem:[%s1348_s3 + $0x28] sm:$0xf] %vm540_vm0, %v685_v17  ;;  %v102_v29 = vmul.f32 %v765_v1, %v31_v13  ;;  %v103_v30 = vmul.f32 %v765_v1, %v32_v14  ;;  %v104_v31 = vmul.f32 %v765_v1, %v33_v15 }
  0x15   :  { %552 = vst.msk [vmem:[%s1348_s3 + $0x2c] sm:$0xf] %vm540_vm0, %v686_v18  ;;  %v690_v28 = vpack.c.bf16 %v235_v19, %v235_v19  ;;  %553 = vst.msk [vmem:[%s1348_s3 + $0x30] sm:$0xf] %vm540_vm0, %v687_v23  ;;  %v172_v32 = vadd.f32 %v770_v2, %v101_v26  ;;  %v105_v33 = vmul.f32 %v765_v1, %v34_v20  ;;  %v46_v26 = vld [vmem:[%s1345_s0 + $0x100] sm:$0xff] }
  0x16   :  { %554 = vst.msk [vmem:[%s1348_s3 + $0x34] sm:$0xf] %vm540_vm0, %v688_v24  ;;  %555 = vst.msk [vmem:[%s1348_s3 + $0x38] sm:$0xf] %vm540_vm0, %v689_v25  ;;  %v106_v34 = vmul.f32 %v765_v1, %v35_v21  ;;  %v107_v35 = vmul.f32 %v765_v1, %v36_v22  ;;  %v173_v36 = vadd.f32 %v770_v2, %v102_v29 }
  0x17   :  { %556 = vst.msk [vmem:[%s1348_s3 + $0x3c] sm:$0xf] %vm540_vm0, %v690_v28  ;;  %v174_v37 = vadd.f32 %v770_v2, %v103_v30  ;;  %v175_v38 = vadd.f32 %v770_v2, %v104_v31  ;;  %v108_v39 = vmul.f32 %v765_v1, %v37_v27  ;;  %v236_v40 = vmax.f32 %v172_v32, 0.0  ;;  %v47_v31 = vld [vmem:[%s1345_s0 + $0x108] sm:$0xff]  ;;  %v48_v32 = vld [vmem:[%s1345_s0 + $0x110] sm:$0xff] }
  0x18   :  { %v176_v41 = vadd.f32 %v770_v2, %v105_v33  ;;  %v177_v42 = vadd.f32 %v770_v2, %v106_v34  ;;  %v178_v43 = vadd.f32 %v770_v2, %v107_v35  ;;  %v237_v44 = vmax.f32 %v173_v36, 0.0  ;;  %v49_v33 = vld [vmem:[%s1345_s0 + $0x118] sm:$0xff] }
  0x19   :  { %v238_v45 = vmax.f32 %v174_v37, 0.0  ;;  %v239_v46 = vmax.f32 %v175_v38, 0.0  ;;  %v179_v47 = vadd.f32 %v770_v2, %v108_v39  ;;  %v691_v49 = vpack.c.bf16 %v236_v40, %v236_v40  ;;  %v50_v38 = vld [vmem:[%s1345_s0 + $0x120] sm:$0xff]  ;;  %v51_v39 = vld [vmem:[%s1345_s0 + $0x128] sm:$0xff]  ;;  %v52_v40 = vld [vmem:[%s1345_s0 + $0x130] sm:$0xff] }
  0x1a   :  { %v240_v50 = vmax.f32 %v176_v41, 0.0  ;;  %v241_v51 = vmax.f32 %v177_v42, 0.0  ;;  %v242_v52 = vmax.f32 %v178_v43, 0.0  ;;  %v692_v56 = vpack.c.bf16 %v237_v44, %v237_v44 }
  0x1b   :  { %v693_v57 = vpack.c.bf16 %v238_v45, %v238_v45  ;;  %v694_v58 = vpack.c.bf16 %v239_v46, %v239_v46  ;;  %v243_v59 = vmax.f32 %v179_v47, 0.0  ;;  %557 = vst.msk [vmem:[%s1348_s3 + $0x40] sm:$0xf] %vm540_vm0, %v691_v49  ;;  %v109_v4 = vmul.f32 %v765_v1, %v38_v48  ;;  %v53_v45 = vld [vmem:[%s1345_s0 + $0x138] sm:$0xff] }
  0x1c   :  { %v695_v63 = vpack.c.bf16 %v240_v50, %v240_v50  ;;  %v696_v0 = vpack.c.bf16 %v241_v51, %v241_v51  ;;  %v697_v3 = vpack.c.bf16 %v242_v52, %v242_v52  ;;  %558 = vst.msk [vmem:[%s1348_s3 + $0x44] sm:$0xf] %vm540_vm0, %v692_v56  ;;  %v110_v7 = vmul.f32 %v765_v1, %v39_v53 }
  0x1d   :  { %559 = vst.msk [vmem:[%s1348_s3 + $0x48] sm:$0xf] %vm540_vm0, %v693_v57  ;;  %560 = vst.msk [vmem:[%s1348_s3 + $0x4c] sm:$0xf] %vm540_vm0, %v694_v58  ;;  %v698_v6 = vpack.c.bf16 %v243_v59, %v243_v59  ;;  %v111_v8 = vmul.f32 %v765_v1, %v40_v54  ;;  %v112_v9 = vmul.f32 %v765_v1, %v41_v55 }
  0x1e   :  { %561 = vst.msk [vmem:[%s1348_s3 + $0x50] sm:$0xf] %vm540_vm0, %v695_v63  ;;  %562 = vst.msk [vmem:[%s1348_s3 + $0x54] sm:$0xf] %vm540_vm0, %v696_v0  ;;  %v180_v10 = vadd.f32 %v770_v2, %v109_v4  ;;  %v113_v11 = vmul.f32 %v765_v1, %v42_v60  ;;  %v114_v12 = vmul.f32 %v765_v1, %v43_v61  ;;  %v54_v4 = vld [vmem:[%s1345_s0 + $0x140] sm:$0xff] }
  0x1f   :  { %563 = vst.msk [vmem:[%s1348_s3 + $0x58] sm:$0xf] %vm540_vm0, %v697_v3  ;;  %v115_v13 = vmul.f32 %v765_v1, %v44_v62  ;;  %564 = vst.msk [vmem:[%s1348_s3 + $0x5c] sm:$0xf] %vm540_vm0, %v698_v6  ;;  %v181_v14 = vadd.f32 %v770_v2, %v110_v7  ;;  %v182_v15 = vadd.f32 %v770_v2, %v111_v8 }
  0x20   :  { %v183_v16 = vadd.f32 %v770_v2, %v112_v9  ;;  %v116_v17 = vmul.f32 %v765_v1, %v45_v5  ;;  %v244_v18 = vmax.f32 %v180_v10, 0.0  ;;  %v184_v19 = vadd.f32 %v770_v2, %v113_v11  ;;  %v55_v9 = vld [vmem:[%s1345_s0 + $0x148] sm:$0xff]  ;;  %v56_v10 = vld [vmem:[%s1345_s0 + $0x150] sm:$0xff]  ;;  %v57_v11 = vld [vmem:[%s1345_s0 + $0x158] sm:$0xff] }
  0x21   :  { %v185_v20 = vadd.f32 %v770_v2, %v114_v12  ;;  %v186_v21 = vadd.f32 %v770_v2, %v115_v13  ;;  %v245_v22 = vmax.f32 %v181_v14, 0.0  ;;  %v246_v23 = vmax.f32 %v182_v15, 0.0 }
  0x22   :  { %v247_v24 = vmax.f32 %v183_v16, 0.0  ;;  %v187_v25 = vadd.f32 %v770_v2, %v116_v17  ;;  %v699_v27 = vpack.c.bf16 %v244_v18, %v244_v18  ;;  %v248_v28 = vmax.f32 %v184_v19, 0.0  ;;  %v58_v16 = vld [vmem:[%s1345_s0 + $0x160] sm:$0xff]  ;;  %v59_v17 = vld [vmem:[%s1345_s0 + $0x168] sm:$0xff]  ;;  %v60_v18 = vld [vmem:[%s1345_s0 + $0x170] sm:$0xff] }
  0x23   :  { %v249_v29 = vmax.f32 %v185_v20, 0.0  ;;  %v250_v30 = vmax.f32 %v186_v21, 0.0  ;;  %v700_v34 = vpack.c.bf16 %v245_v22, %v245_v22  ;;  %v701_v35 = vpack.c.bf16 %v246_v23, %v246_v23  ;;  %v61_v23 = vld [vmem:[%s1345_s0 + $0x178] sm:$0xff] }
  0x24   :  { %v702_v36 = vpack.c.bf16 %v247_v24, %v247_v24  ;;  %v251_v37 = vmax.f32 %v187_v25, 0.0  ;;  %565 = vst.msk [vmem:[%s1348_s3 + $0x60] sm:$0xf] %vm540_vm0, %v699_v27  ;;  %v703_v41 = vpack.c.bf16 %v248_v28, %v248_v28  ;;  %v117_v44 = vmul.f32 %v765_v1, %v46_v26 }
  0x25   :  { %v704_v42 = vpack.c.bf16 %v249_v29, %v249_v29  ;;  %v705_v43 = vpack.c.bf16 %v250_v30, %v250_v30  ;;  %566 = vst.msk [vmem:[%s1348_s3 + $0x64] sm:$0xf] %vm540_vm0, %v700_v34  ;;  %567 = vst.msk [vmem:[%s1348_s3 + $0x68] sm:$0xf] %vm540_vm0, %v701_v35  ;;  %v118_v47 = vmul.f32 %v765_v1, %v47_v31 }
  0x26   :  { %568 = vst.msk [vmem:[%s1348_s3 + $0x6c] sm:$0xf] %vm540_vm0, %v702_v36  ;;  %v706_v46 = vpack.c.bf16 %v251_v37, %v251_v37  ;;  %v119_v48 = vmul.f32 %v765_v1, %v48_v32  ;;  %v120_v49 = vmul.f32 %v765_v1, %v49_v33  ;;  %569 = vst.msk [vmem:[%s1348_s3 + $0x70] sm:$0xf] %vm540_vm0, %v703_v41 }
  0x27   :  { %570 = vst.msk [vmem:[%s1348_s3 + $0x74] sm:$0xf] %vm540_vm0, %v704_v42  ;;  %571 = vst.msk [vmem:[%s1348_s3 + $0x78] sm:$0xf] %vm540_vm0, %v705_v43  ;;  %v188_v50 = vadd.f32 %v770_v2, %v117_v44  ;;  %v121_v51 = vmul.f32 %v765_v1, %v50_v38  ;;  %v122_v52 = vmul.f32 %v765_v1, %v51_v39  ;;  %v62_v44 = vld [vmem:[%s1345_s0 + $0x180] sm:$0xff] }
  0x28   :  { %v123_v53 = vmul.f32 %v765_v1, %v52_v40  ;;  %572 = vst.msk [vmem:[%s1348_s3 + $0x7c] sm:$0xf] %vm540_vm0, %v706_v46  ;;  %v189_v54 = vadd.f32 %v770_v2, %v118_v47  ;;  %v190_v55 = vadd.f32 %v770_v2, %v119_v48  ;;  %v191_v56 = vadd.f32 %v770_v2, %v120_v49  ;;  %v63_v49 = vld [vmem:[%s1345_s0 + $0x188] sm:$0xff] }
  0x29   :  { %v124_v57 = vmul.f32 %v765_v1, %v53_v45  ;;  %v252_v58 = vmax.f32 %v188_v50, 0.0  ;;  %v192_v59 = vadd.f32 %v770_v2, %v121_v51  ;;  %v193_v60 = vadd.f32 %v770_v2, %v122_v52  ;;  %v64_v50 = vld [vmem:[%s1345_s0 + $0x190] sm:$0xff]  ;;  %v65_v51 = vld [vmem:[%s1345_s0 + $0x198] sm:$0xff] }
  0x2a   :  { %v194_v61 = vadd.f32 %v770_v2, %v123_v53  ;;  %v253_v62 = vmax.f32 %v189_v54, 0.0  ;;  %v254_v63 = vmax.f32 %v190_v55, 0.0  ;;  %v255_v0 = vmax.f32 %v191_v56, 0.0  ;;  %v66_v56 = vld [vmem:[%s1345_s0 + $0x1a0] sm:$0xff] }
  0x2b   :  { %v195_v3 = vadd.f32 %v770_v2, %v124_v57  ;;  %v707_v5 = vpack.c.bf16 %v252_v58, %v252_v58  ;;  %v256_v6 = vmax.f32 %v192_v59, 0.0  ;;  %v257_v7 = vmax.f32 %v193_v60, 0.0  ;;  %v67_v57 = vld [vmem:[%s1345_s0 + $0x1a8] sm:$0xff]  ;;  %v68_v58 = vld [vmem:[%s1345_s0 + $0x1b0] sm:$0xff] }
  0x2c   :  { %v258_v8 = vmax.f32 %v194_v61, 0.0  ;;  %v708_v12 = vpack.c.bf16 %v253_v62, %v253_v62  ;;  %v709_v13 = vpack.c.bf16 %v254_v63, %v254_v63  ;;  %v710_v14 = vpack.c.bf16 %v255_v0, %v255_v0  ;;  %v69_v63 = vld [vmem:[%s1345_s0 + $0x1b8] sm:$0xff] }
  0x2d   :  { %v259_v15 = vmax.f32 %v195_v3, 0.0  ;;  %573 = vst.msk [vmem:[%s1348_s3 + $0x80] sm:$0xf] %vm540_vm0, %v707_v5  ;;  %v711_v19 = vpack.c.bf16 %v256_v6, %v256_v6  ;;  %v712_v20 = vpack.c.bf16 %v257_v7, %v257_v7  ;;  %v125_v22 = vmul.f32 %v765_v1, %v54_v4 }
  0x2e   :  { %v713_v21 = vpack.c.bf16 %v258_v8, %v258_v8  ;;  %574 = vst.msk [vmem:[%s1348_s3 + $0x84] sm:$0xf] %vm540_vm0, %v708_v12  ;;  %575 = vst.msk [vmem:[%s1348_s3 + $0x88] sm:$0xf] %vm540_vm0, %v709_v13  ;;  %v126_v25 = vmul.f32 %v765_v1, %v55_v9  ;;  %v127_v26 = vmul.f32 %v765_v1, %v56_v10 }
  0x2f   :  { %576 = vst.msk [vmem:[%s1348_s3 + $0x8c] sm:$0xf] %vm540_vm0, %v710_v14  ;;  %v714_v24 = vpack.c.bf16 %v259_v15, %v259_v15  ;;  %v128_v27 = vmul.f32 %v765_v1, %v57_v11  ;;  %577 = vst.msk [vmem:[%s1348_s3 + $0x90] sm:$0xf] %vm540_vm0, %v711_v19  ;;  %v196_v28 = vadd.f32 %v770_v2, %v125_v22  ;;  %v70_v22 = vld [vmem:[%s1345_s0 + $0x1c0] sm:$0xff] }
  0x30   :  { %578 = vst.msk [vmem:[%s1348_s3 + $0x94] sm:$0xf] %vm540_vm0, %v712_v20  ;;  %579 = vst.msk [vmem:[%s1348_s3 + $0x98] sm:$0xf] %vm540_vm0, %v713_v21  ;;  %v129_v29 = vmul.f32 %v765_v1, %v58_v16  ;;  %v130_v30 = vmul.f32 %v765_v1, %v59_v17  ;;  %v131_v31 = vmul.f32 %v765_v1, %v60_v18 }
  0x31   :  { %580 = vst.msk [vmem:[%s1348_s3 + $0x9c] sm:$0xf] %vm540_vm0, %v714_v24  ;;  %v197_v32 = vadd.f32 %v770_v2, %v126_v25  ;;  %v198_v33 = vadd.f32 %v770_v2, %v127_v26  ;;  %v199_v34 = vadd.f32 %v770_v2, %v128_v27  ;;  %v132_v35 = vmul.f32 %v765_v1, %v61_v23  ;;  %v71_v27 = vld [vmem:[%s1345_s0 + $0x1c8] sm:$0xff] }
  0x32   :  { %v260_v36 = vmax.f32 %v196_v28, 0.0  ;;  %v200_v37 = vadd.f32 %v770_v2, %v129_v29  ;;  %v201_v38 = vadd.f32 %v770_v2, %v130_v30  ;;  %v202_v39 = vadd.f32 %v770_v2, %v131_v31  ;;  %v72_v28 = vld [vmem:[%s1345_s0 + $0x1d0] sm:$0xff]  ;;  %v73_v29 = vld [vmem:[%s1345_s0 + $0x1d8] sm:$0xff] }
  0x33   :  { %v261_v40 = vmax.f32 %v197_v32, 0.0  ;;  %v262_v41 = vmax.f32 %v198_v33, 0.0  ;;  %v263_v42 = vmax.f32 %v199_v34, 0.0  ;;  %v203_v43 = vadd.f32 %v770_v2, %v132_v35  ;;  %v74_v34 = vld [vmem:[%s1345_s0 + $0x1e0] sm:$0xff]  ;;  %v75_v35 = vld [vmem:[%s1345_s0 + $0x1e8] sm:$0xff] }
  0x34   :  { %v715_v45 = vpack.c.bf16 %v260_v36, %v260_v36  ;;  %v264_v46 = vmax.f32 %v200_v37, 0.0  ;;  %v265_v47 = vmax.f32 %v201_v38, 0.0  ;;  %v266_v48 = vmax.f32 %v202_v39, 0.0  ;;  %v76_v36 = vld [vmem:[%s1345_s0 + $0x1f0] sm:$0xff] }
  0x35   :  { %v716_v52 = vpack.c.bf16 %v261_v40, %v261_v40  ;;  %v717_v53 = vpack.c.bf16 %v262_v41, %v262_v41  ;;  %v718_v54 = vpack.c.bf16 %v263_v42, %v263_v42  ;;  %v267_v55 = vmax.f32 %v203_v43, 0.0  ;;  %v77_v41 = vld [vmem:[%s1345_s0 + $0x1f8] sm:$0xff] }
  0x36   :  { %581 = vst.msk [vmem:[%s1348_s3 + $0xa0] sm:$0xf] %vm540_vm0, %v715_v45  ;;  %v719_v59 = vpack.c.bf16 %v264_v46, %v264_v46  ;;  %v720_v60 = vpack.c.bf16 %v265_v47, %v265_v47  ;;  %v721_v61 = vpack.c.bf16 %v266_v48, %v266_v48  ;;  %v133_v62 = vmul.f32 %v765_v1, %v62_v44 }
  0x37   :  { %582 = vst.msk [vmem:[%s1348_s3 + $0xa4] sm:$0xf] %vm540_vm0, %v716_v52  ;;  %583 = vst.msk [vmem:[%s1348_s3 + $0xa8] sm:$0xf] %vm540_vm0, %v717_v53  ;;  %v722_v0 = vpack.c.bf16 %v267_v55, %v267_v55  ;;  %v134_v3 = vmul.f32 %v765_v1, %v63_v49  ;;  %v135_v4 = vmul.f32 %v765_v1, %v64_v50 }
  0x38   :  { %584 = vst.msk [vmem:[%s1348_s3 + $0xac] sm:$0xf] %vm540_vm0, %v718_v54  ;;  %v136_v5 = vmul.f32 %v765_v1, %v65_v51  ;;  %585 = vst.msk [vmem:[%s1348_s3 + $0xb0] sm:$0xf] %vm540_vm0, %v719_v59  ;;  %v204_v6 = vadd.f32 %v770_v2, %v133_v62  ;;  %v137_v7 = vmul.f32 %v765_v1, %v66_v56 }
  0x39   :  { %586 = vst.msk [vmem:[%s1348_s3 + $0xb4] sm:$0xf] %vm540_vm0, %v720_v60  ;;  %587 = vst.msk [vmem:[%s1348_s3 + $0xb8] sm:$0xf] %vm540_vm0, %v721_v61  ;;  %v138_v8 = vmul.f32 %v765_v1, %v67_v57  ;;  %v139_v9 = vmul.f32 %v765_v1, %v68_v58  ;;  %v205_v10 = vadd.f32 %v770_v2, %v134_v3 }
  0x3a   :  { %588 = vst.msk [vmem:[%s1348_s3 + $0xbc] sm:$0xf] %vm540_vm0, %v722_v0  ;;  %v206_v11 = vadd.f32 %v770_v2, %v135_v4  ;;  %v207_v12 = vadd.f32 %v770_v2, %v136_v5  ;;  %v140_v13 = vmul.f32 %v765_v1, %v69_v63  ;;  %v268_v14 = vmax.f32 %v204_v6, 0.0 }
  0x3b   :  { %v208_v15 = vadd.f32 %v770_v2, %v137_v7  ;;  %v209_v16 = vadd.f32 %v770_v2, %v138_v8  ;;  %v210_v17 = vadd.f32 %v770_v2, %v139_v9  ;;  %v269_v18 = vmax.f32 %v205_v10, 0.0 }
  0x3c   :  { %v270_v19 = vmax.f32 %v206_v11, 0.0  ;;  %v271_v20 = vmax.f32 %v207_v12, 0.0  ;;  %v211_v21 = vadd.f32 %v770_v2, %v140_v13  ;;  %v723_v23 = vpack.c.bf16 %v268_v14, %v268_v14 }
  0x3d   :  { %v272_v24 = vmax.f32 %v208_v15, 0.0  ;;  %v273_v25 = vmax.f32 %v209_v16, 0.0  ;;  %v274_v26 = vmax.f32 %v210_v17, 0.0  ;;  %v724_v30 = vpack.c.bf16 %v269_v18, %v269_v18 }
  0x3e   :  { %v725_v31 = vpack.c.bf16 %v270_v19, %v270_v19  ;;  %v726_v32 = vpack.c.bf16 %v271_v20, %v271_v20  ;;  %v275_v33 = vmax.f32 %v211_v21, 0.0  ;;  %589 = vst.msk [vmem:[%s1348_s3 + $0xc0] sm:$0xf] %vm540_vm0, %v723_v23  ;;  %v141_v40 = vmul.f32 %v765_v1, %v70_v22 }
  0x3f   :  { %v727_v37 = vpack.c.bf16 %v272_v24, %v272_v24  ;;  %v728_v38 = vpack.c.bf16 %v273_v25, %v273_v25  ;;  %v729_v39 = vpack.c.bf16 %v274_v26, %v274_v26  ;;  %590 = vst.msk [vmem:[%s1348_s3 + $0xc4] sm:$0xf] %vm540_vm0, %v724_v30  ;;  %v142_v43 = vmul.f32 %v765_v1, %v71_v27 }
  0x40   :  { %591 = vst.msk [vmem:[%s1348_s3 + $0xc8] sm:$0xf] %vm540_vm0, %v725_v31  ;;  %592 = vst.msk [vmem:[%s1348_s3 + $0xcc] sm:$0xf] %vm540_vm0, %v726_v32  ;;  %v730_v42 = vpack.c.bf16 %v275_v33, %v275_v33  ;;  %v143_v44 = vmul.f32 %v765_v1, %v72_v28  ;;  %v144_v45 = vmul.f32 %v765_v1, %v73_v29 }
  0x41   :  { %593 = vst.msk [vmem:[%s1348_s3 + $0xd0] sm:$0xf] %vm540_vm0, %v727_v37  ;;  %594 = vst.msk [vmem:[%s1348_s3 + $0xd4] sm:$0xf] %vm540_vm0, %v728_v38  ;;  %v212_v46 = vadd.f32 %v770_v2, %v141_v40  ;;  %v145_v47 = vmul.f32 %v765_v1, %v74_v34  ;;  %v146_v48 = vmul.f32 %v765_v1, %v75_v35 }
  0x42   :  { %595 = vst.msk [vmem:[%s1348_s3 + $0xd8] sm:$0xf] %vm540_vm0, %v729_v39  ;;  %v147_v49 = vmul.f32 %v765_v1, %v76_v36  ;;  %596 = vst.msk [vmem:[%s1348_s3 + $0xdc] sm:$0xf] %vm540_vm0, %v730_v42  ;;  %v213_v50 = vadd.f32 %v770_v2, %v142_v43  ;;  %v214_v51 = vadd.f32 %v770_v2, %v143_v44 }
  0x43   :  { %v215_v52 = vadd.f32 %v770_v2, %v144_v45  ;;  %v148_v53 = vmul.f32 %v765_v1, %v77_v41  ;;  %v276_v54 = vmax.f32 %v212_v46, 0.0  ;;  %v216_v55 = vadd.f32 %v770_v2, %v145_v47 }
  0x44   :  { %v217_v56 = vadd.f32 %v770_v2, %v146_v48  ;;  %v218_v57 = vadd.f32 %v770_v2, %v147_v49  ;;  %v277_v58 = vmax.f32 %v213_v50, 0.0  ;;  %v278_v59 = vmax.f32 %v214_v51, 0.0 }
  0x45   :  { %v279_v60 = vmax.f32 %v215_v52, 0.0  ;;  %v219_v61 = vadd.f32 %v770_v2, %v148_v53  ;;  %v731_v62 = vpack.c.bf16 %v276_v54, %v276_v54  ;;  %v280_v63 = vmax.f32 %v216_v55, 0.0 }
  0x46   :  { %v281_v0 = vmax.f32 %v217_v56, 0.0  ;;  %v282_v3 = vmax.f32 %v218_v57, 0.0  ;;  %v732_v4 = vpack.c.bf16 %v277_v58, %v277_v58  ;;  %v733_v5 = vpack.c.bf16 %v278_v59, %v278_v59 }
  0x47   :  { %v734_v6 = vpack.c.bf16 %v279_v60, %v279_v60  ;;  %v283_v1 = vmax.f32 %v219_v61, 0.0  ;;  %597 = vst.msk [vmem:[%s1348_s3 + $0xe0] sm:$0xf] %vm540_vm0, %v731_v62  ;;  %v735_v7 = vpack.c.bf16 %v280_v63, %v280_v63 }
  0x48   :  { %v736_v8 = vpack.c.bf16 %v281_v0, %v281_v0  ;;  %v737_v9 = vpack.c.bf16 %v282_v3, %v282_v3  ;;  %598 = vst.msk [vmem:[%s1348_s3 + $0xe4] sm:$0xf] %vm540_vm0, %v732_v4  ;;  %599 = vst.msk [vmem:[%s1348_s3 + $0xe8] sm:$0xf] %vm540_vm0, %v733_v5 }
  0x49   :  { %600 = vst.msk [vmem:[%s1348_s3 + $0xec] sm:$0xf] %vm540_vm0, %v734_v6  ;;  %v738_v2 = vpack.c.bf16 %v283_v1, %v283_v1  ;;  %601 = vst.msk [vmem:[%s1348_s3 + $0xf0] sm:$0xf] %vm540_vm0, %v735_v7 }
  0x4a   :  { %602 = vst.msk [vmem:[%s1348_s3 + $0xf4] sm:$0xf] %vm540_vm0, %v736_v8  ;;  %603 = vst.msk [vmem:[%s1348_s3 + $0xf8] sm:$0xf] %vm540_vm0, %v737_v9 }
  0x4b   :  { %604 = vst.msk [vmem:[%s1348_s3 + $0xfc] sm:$0xf] %vm540_vm0, %v738_v2 }

// kernel: preact_block_forward.6
= control target key start
LH: loop header
LB: loop body
LE: loop exit
PB: predicated region body
PF: predicated region fallthrough
CT: control target
= control target key end

     0   :  { %vm94_vm0 = vcmask 293888   ;;  %vm119_vm1 = vcmask 1041408   ;;  %vm346_vm2 = vcmask 60416   ;;  %s644_s1 = inlined_call_operand.vmem [shape: bf16[36,8], index: 1, kind: input, shape index: {}]   ;;  %s645_s0 = inlined_call_operand.vmem [shape: bf16[128,36], index: 0, kind: input, shape index: {}]   ;;  %s646_s2 = inlined_call_operand.vmem [shape: f32[1,8], index: 2, kind: input, shape index: {}]   ;;  %s647_s3 = inlined_call_operand.vmem [shape: f32[1,8], index: 3, kind: input, shape index: {}]   ;;  %s648_s4 = inlined_call_operand.vmem [shape: bf16[128,8], index: 4, kind: output, shape index: {}]  }
   0x1   :  { %v461_v0 = vld [vmem:[%s644_s1] sm:$0xff]   ;;  %v462_v1 = vld [vmem:[%s644_s1 + $0x8] sm:$0xff]   ;;  %v463_v2 = vld [vmem:[%s644_s1 + $0x10] ss:$0 sps:$4 sm:$0x33]  }
   0x2   :  { %431 = vmatprep.subr.bf16.mxu0 %v461_v0  ;;  %453 = vmatprep.subr.bf16.mxu1 %v461_v0  ;;  %v464_v3 = vld [vmem:[%s645_s0] sm:$0xff]   ;;  %v121_v5 = vsel %vm119_vm1, %v463_v2, 0  ;;  %v466_v6 = vld [vmem:[%s645_s0 + $0x8] sm:$0xff]   ;;  %v468_v8 = vld [vmem:[%s645_s0 + $0x10] sm:$0xff]  }
   0x3   :  { %432 = vmatpush3.bf16.msra.mxu0 %v461_v0  ;;  %456 = vmatpush3.bf16.msra.mxu1 %v461_v0  ;;  %v465_v4 = vld [vmem:[%s645_s0 + $0x20] sm:$0xff]   ;;  %v467_v7 = vld [vmem:[%s645_s0 + $0x28] sm:$0xff]   ;;  %v469_v9 = vld [vmem:[%s645_s0 + $0x30] sm:$0xff]  }
   0x4   :  { %433 = vmatprep.subr.bf16.mxu0 %v462_v1  ;;  %454 = vmatprep.subr.bf16.mxu1 %v462_v1  ;;  %v470_v10 = vld [vmem:[%s645_s0 + $0x18] sm:$0xff]   ;;  %v541_v12 = vld [vmem:[%s646_s2] ss:$0 sm:$0xff] }
   0x5   :  { %437 = vmatprep.mubr.msk.bf16.mxu0 %vm94_vm0, %v464_v3  ;;  %445 = vmatprep.mubr.msk.bf16.mxu1 %vm94_vm0, %v465_v4  ;;  %v471_v11 = vld [vmem:[%s645_s0 + $0x38] sm:$0xff]   ;;  %v546_v14 = vld [vmem:[%s647_s3] ss:$0 sm:$0xff] }
   0x7   :  { %434 = vmatpush3.bf16.msra.mxu0 %v462_v1  ;;  %457 = vmatpush3.bf16.msra.mxu1 %v462_v1 }
   0x8   :  { %459 = vmatprep.subr.msk.bf16.mxu0 %vm119_vm1, %v463_v2  ;;  %460 = vmatprep.subr.msk.bf16.mxu1 %vm119_vm1, %v463_v2 }
   0xb   :  { %436 = vmatpush3.bf16.msra.mxu0 %v121_v5  ;;  %458 = vmatpush3.bf16.msra.mxu1 %v121_v5 }
   0xe   :  { %438 = vmatmul.mubr.msk.bf16.vlgmr.msra.gmra.mrb[0].mxu0 %vm94_vm0, %v466_v6  ;;  %446 = vmatmul.mubr.msk.bf16.vlgmr.msra.gmra.mrb[0].mxu1 %vm94_vm0, %v467_v7 }
   0xf   :  { %441 = vmatprep.mubr.msk.bf16.mxu0 %vm94_vm0, %v468_v8  ;;  %449 = vmatprep.mubr.msk.bf16.mxu1 %vm94_vm0, %v469_v9 }
  0x16   :  { %442 = vmatmul.mubr.msk.bf16.gmra.mrb[4].mxu0 %vm94_vm0, %v470_v10  ;;  %450 = vmatmul.mubr.msk.bf16.gmra.mrb[4].mxu1 %vm94_vm0, %v471_v11 }
  0xe1   :  { %v439_v13 = vpop.f32.mrb[0].mxu0  ;;  %v447_v15 = vpop.f32.mrb[0].mxu1 }
  0xe2   :  { %v229_v16 = vmul.f32 %v439_v13, %v541_v12  ;;  %v237_v17 = vmul.f32 %v447_v15, %v541_v12  ;;  %v157_v18 = vpop.f32.mrb[1].mxu0  ;;  %v189_v19 = vpop.f32.mrb[1].mxu1 }
  0xe3   :  { %v227_v20 = vmul.f32 %v541_v12, %v157_v18  ;;  %v235_v21 = vmul.f32 %v541_v12, %v189_v19  ;;  %v440_v22 = vpop.f32.mrb[2].mxu0  ;;  %v448_v23 = vpop.f32.mrb[2].mxu1 }
  0xe4   :  { %v252_v24 = vadd.f32 %v546_v14, %v229_v16  ;;  %v260_v25 = vadd.f32 %v546_v14, %v237_v17  ;;  %v230_v26 = vmul.f32 %v440_v22, %v541_v12  ;;  %v238_v27 = vmul.f32 %v448_v23, %v541_v12  ;;  %v160_v28 = vpop.f32.mrb[3].mxu0  ;;  %v192_v29 = vpop.f32.mrb[3].mxu1 }
  0xe5   :  { %v250_v30 = vadd.f32 %v546_v14, %v227_v20  ;;  %v258_v31 = vadd.f32 %v546_v14, %v235_v21  ;;  %v228_v32 = vmul.f32 %v541_v12, %v160_v28  ;;  %v236_v33 = vmul.f32 %v541_v12, %v192_v29 }
  0xe6   :  { %v268_v34 = vmax.f32 %v252_v24, 0.0  ;;  %v276_v35 = vmax.f32 %v260_v25, 0.0  ;;  %v253_v36 = vadd.f32 %v546_v14, %v230_v26  ;;  %v261_v37 = vadd.f32 %v546_v14, %v238_v27 }
  0xe7   :  { %v266_v38 = vmax.f32 %v250_v30, 0.0  ;;  %v274_v39 = vmax.f32 %v258_v31, 0.0  ;;  %v251_v40 = vadd.f32 %v546_v14, %v228_v32  ;;  %v259_v41 = vadd.f32 %v546_v14, %v236_v33 }
  0xe8   :  { %v406_v42 = vpack.c.bf16 %v268_v34, %v268_v34  ;;  %v414_v43 = vpack.c.bf16 %v276_v35, %v276_v35  ;;  %v269_v44 = vmax.f32 %v253_v36, 0.0  ;;  %v277_v45 = vmax.f32 %v261_v37, 0.0 }
  0xe9   :  { %v404_v46 = vpack.c.bf16 %v266_v38, %v266_v38  ;;  %v412_v47 = vpack.c.bf16 %v274_v39, %v274_v39  ;;  %v267_v48 = vmax.f32 %v251_v40, 0.0  ;;  %v275_v49 = vmax.f32 %v259_v41, 0.0  ;;  %v443_v50 = vpop.f32.mrb[4].mxu0  ;;  %v451_v51 = vpop.f32.mrb[4].mxu1 }
  0xea   :  { %349 = vst.msk [vmem:[%s648_s4 + $0x8] sm:$0xf] %vm346_vm2, %v406_v42  ;;  %357 = vst.msk [vmem:[%s648_s4 + $0x28] sm:$0xf] %vm346_vm2, %v414_v43  ;;  %v407_v52 = vpack.c.bf16 %v269_v44, %v269_v44  ;;  %v415_v53 = vpack.c.bf16 %v277_v45, %v277_v45  ;;  %v233_v54 = vmul.f32 %v443_v50, %v541_v12  ;;  %v173_v56 = vpop.f32.mrb[5].mxu0  ;;  %v205_v57 = vpop.f32.mrb[5].mxu1 }
  0xeb   :  { %v241_v55 = vmul.f32 %v451_v51, %v541_v12  ;;  %347 = vst.msk [vmem:[%s648_s4] sm:$0xf] %vm346_vm2, %v404_v46  ;;  %355 = vst.msk [vmem:[%s648_s4 + $0x20] sm:$0xf] %vm346_vm2, %v412_v47  ;;  %v405_v58 = vpack.c.bf16 %v267_v48, %v267_v48  ;;  %v413_v59 = vpack.c.bf16 %v275_v49, %v275_v49  ;;  %v444_v62 = vpop.f32.mrb[6].mxu0  ;;  %v452_v63 = vpop.f32.mrb[6].mxu1 }
  0xec   :  { %v231_v60 = vmul.f32 %v541_v12, %v173_v56  ;;  %v239_v61 = vmul.f32 %v541_v12, %v205_v57  ;;  %350 = vst.msk [vmem:[%s648_s4 + $0xc] sm:$0xf] %vm346_vm2, %v407_v52  ;;  %358 = vst.msk [vmem:[%s648_s4 + $0x2c] sm:$0xf] %vm346_vm2, %v415_v53  ;;  %v256_v0 = vadd.f32 %v546_v14, %v233_v54  ;;  %v176_v4 = vpop.f32.mrb[7].mxu0  ;;  %v208_v5 = vpop.f32.mrb[7].mxu1 }
  0xed   :  { %v264_v1 = vadd.f32 %v546_v14, %v241_v55  ;;  %v234_v2 = vmul.f32 %v444_v62, %v541_v12  ;;  %v242_v3 = vmul.f32 %v452_v63, %v541_v12  ;;  %348 = vst.msk [vmem:[%s648_s4 + $0x4] sm:$0xf] %vm346_vm2, %v405_v58  ;;  %356 = vst.msk [vmem:[%s648_s4 + $0x24] sm:$0xf] %vm346_vm2, %v413_v59 }
  0xee   :  { %v254_v6 = vadd.f32 %v546_v14, %v231_v60  ;;  %v262_v7 = vadd.f32 %v546_v14, %v239_v61  ;;  %v232_v8 = vmul.f32 %v541_v12, %v176_v4  ;;  %v240_v9 = vmul.f32 %v541_v12, %v208_v5 }
  0xef   :  { %v272_v10 = vmax.f32 %v256_v0, 0.0  ;;  %v280_v11 = vmax.f32 %v264_v1, 0.0  ;;  %v257_v13 = vadd.f32 %v546_v14, %v234_v2  ;;  %v265_v15 = vadd.f32 %v546_v14, %v242_v3 }
  0xf0   :  { %v270_v16 = vmax.f32 %v254_v6, 0.0  ;;  %v278_v17 = vmax.f32 %v262_v7, 0.0  ;;  %v255_v18 = vadd.f32 %v546_v14, %v232_v8  ;;  %v263_v19 = vadd.f32 %v546_v14, %v240_v9 }
  0xf1   :  { %v410_v20 = vpack.c.bf16 %v272_v10, %v272_v10  ;;  %v418_v21 = vpack.c.bf16 %v280_v11, %v280_v11  ;;  %v273_v22 = vmax.f32 %v257_v13, 0.0  ;;  %v281_v23 = vmax.f32 %v265_v15, 0.0 }
  0xf2   :  { %v408_v24 = vpack.c.bf16 %v270_v16, %v270_v16  ;;  %v416_v25 = vpack.c.bf16 %v278_v17, %v278_v17  ;;  %v271_v26 = vmax.f32 %v255_v18, 0.0  ;;  %v279_v12 = vmax.f32 %v263_v19, 0.0 }
  0xf3   :  { %353 = vst.msk [vmem:[%s648_s4 + $0x18] sm:$0xf] %vm346_vm2, %v410_v20  ;;  %361 = vst.msk [vmem:[%s648_s4 + $0x38] sm:$0xf] %vm346_vm2, %v418_v21  ;;  %v411_v27 = vpack.c.bf16 %v273_v22, %v273_v22  ;;  %v419_v14 = vpack.c.bf16 %v281_v23, %v281_v23 }
  0xf4   :  { %351 = vst.msk [vmem:[%s648_s4 + $0x10] sm:$0xf] %vm346_vm2, %v408_v24  ;;  %359 = vst.msk [vmem:[%s648_s4 + $0x30] sm:$0xf] %vm346_vm2, %v416_v25  ;;  %v409_v28 = vpack.c.bf16 %v271_v26, %v271_v26  ;;  %v417_v29 = vpack.c.bf16 %v279_v12, %v279_v12 }
  0xf5   :  { %354 = vst.msk [vmem:[%s648_s4 + $0x1c] sm:$0xf] %vm346_vm2, %v411_v27  ;;  %362 = vst.msk [vmem:[%s648_s4 + $0x3c] sm:$0xf] %vm346_vm2, %v419_v14 }
  0xf6   :  { %352 = vst.msk [vmem:[%s648_s4 + $0x14] sm:$0xf] %vm346_vm2, %v409_v28  ;;  %360 = vst.msk [vmem:[%s648_s4 + $0x34] sm:$0xf] %vm346_vm2, %v417_v29 }

// kernel: preact_block_forward.7
= control target key start
LH: loop header
LB: loop body
LE: loop exit
PB: predicated region body
PF: predicated region fallthrough
CT: control target
= control target key end

     0   :  { %vm123_vm0 = vcmask 588800   ;;  %vm148_vm1 = vcmask 1043456   ;;  %vm249_vm2 = vcmask 64512   ;;  %s534_s1 = inlined_call_operand.vmem [shape: bf16[72,8], index: 1, kind: input, shape index: {}]   ;;  %s535_s0 = inlined_call_operand.vmem [shape: bf16[128,72], index: 0, kind: input, shape index: {}]   ;;  %s536_s2 = inlined_call_operand.vmem [shape: f32[128,8], index: 2, kind: input, shape index: {}]   ;;  %s537_s3 = inlined_call_operand.vmem [shape: f32[128,8], index: 3, kind: output, shape index: {}]  }
   0x1   :  { %v342_v0 = vld [vmem:[%s534_s1] sm:$0xff]   ;;  %v343_v1 = vld [vmem:[%s534_s1 + $0x8] sm:$0xff]   ;;  %v344_v2 = vld [vmem:[%s534_s1 + $0x10] sm:$0xff]  }
   0x2   :  { %304 = vmatprep.subr.bf16.mxu0 %v342_v0  ;;  %330 = vmatprep.subr.bf16.mxu1 %v342_v0  ;;  %v347_v3 = vld [vmem:[%s535_s0] sm:$0xff]   ;;  %v345_v5 = vld [vmem:[%s534_s1 + $0x18] sm:$0xff]   ;;  %v349_v8 = vld [vmem:[%s535_s0 + $0x8] sm:$0xff]  }
   0x3   :  { %305 = vmatpush3.bf16.msra.mxu0 %v342_v0  ;;  %335 = vmatpush3.bf16.msra.mxu1 %v342_v0  ;;  %v348_v4 = vld [vmem:[%s535_s0 + $0x20] sm:$0xff]   ;;  %v350_v9 = vld [vmem:[%s535_s0 + $0x28] sm:$0xff]   ;;  %v351_v10 = vld [vmem:[%s535_s0 + $0x10] sm:$0xff]  }
   0x4   :  { %306 = vmatprep.subr.bf16.mxu0 %v343_v1  ;;  %331 = vmatprep.subr.bf16.mxu1 %v343_v1  ;;  %v346_v6 = vld [vmem:[%s534_s1 + $0x20] ss:$0 sps:$4 sm:$0xff]   ;;  %v352_v11 = vld [vmem:[%s535_s0 + $0x30] sm:$0xff]   ;;  %v353_v12 = vld [vmem:[%s535_s0 + $0x18] sm:$0xff]  }
   0x5   :  { %314 = vmatprep.mubr.msk.bf16.mxu0 %vm123_vm0, %v347_v3  ;;  %322 = vmatprep.mubr.msk.bf16.mxu1 %vm123_vm0, %v348_v4  ;;  %v150_v7 = vsel %vm148_vm1, %v346_v6, 0  ;;  %v354_v13 = vld [vmem:[%s535_s0 + $0x38] sm:$0xff]   ;;  %v42_v14 = vld [vmem:[%s536_s2 + $0x10] sm:$0xff]  ;;  %v40_v16 = vld [vmem:[%s536_s2] sm:$0xff] }
   0x6   :  { %v50_v15 = vld [vmem:[%s536_s2 + $0x50] sm:$0xff]  ;;  %v48_v17 = vld [vmem:[%s536_s2 + $0x40] sm:$0xff]  ;;  %v43_v20 = vld [vmem:[%s536_s2 + $0x18] sm:$0xff] }
   0x7   :  { %307 = vmatpush3.bf16.msra.mxu0 %v343_v1  ;;  %336 = vmatpush3.bf16.msra.mxu1 %v343_v1  ;;  %v51_v21 = vld [vmem:[%s536_s2 + $0x58] sm:$0xff]  ;;  %v41_v26 = vld [vmem:[%s536_s2 + $0x8] sm:$0xff]  ;;  %v46_v38 = vld [vmem:[%s536_s2 + $0x30] sm:$0xff] }
   0x8   :  { %308 = vmatprep.subr.bf16.mxu0 %v344_v2  ;;  %332 = vmatprep.subr.bf16.mxu1 %v344_v2  ;;  %v49_v27 = vld [vmem:[%s536_s2 + $0x48] sm:$0xff]  ;;  %v54_v39 = vld [vmem:[%s536_s2 + $0x70] sm:$0xff]  ;;  %v44_v40 = vld [vmem:[%s536_s2 + $0x20] sm:$0xff] }
   0x9   :  { %v52_v41 = vld [vmem:[%s536_s2 + $0x60] sm:$0xff]  ;;  %v47_v44 = vld [vmem:[%s536_s2 + $0x38] sm:$0xff]  ;;  %v45_v50 = vld [vmem:[%s536_s2 + $0x28] sm:$0xff] }
   0xa   :  { %v55_v45 = vld [vmem:[%s536_s2 + $0x78] sm:$0xff]  ;;  %v53_v51 = vld [vmem:[%s536_s2 + $0x68] sm:$0xff] }
   0xb   :  { %309 = vmatpush3.bf16.msra.mxu0 %v344_v2  ;;  %337 = vmatpush3.bf16.msra.mxu1 %v344_v2 }
   0xc   :  { %310 = vmatprep.subr.bf16.mxu0 %v345_v5  ;;  %333 = vmatprep.subr.bf16.mxu1 %v345_v5 }
   0xf   :  { %311 = vmatpush3.bf16.msra.mxu0 %v345_v5  ;;  %338 = vmatpush3.bf16.msra.mxu1 %v345_v5 }
  0x10   :  { %340 = vmatprep.subr.msk.bf16.mxu0 %vm148_vm1, %v346_v6  ;;  %341 = vmatprep.subr.msk.bf16.mxu1 %vm148_vm1, %v346_v6 }
  0x13   :  { %313 = vmatpush3.bf16.msra.mxu0 %v150_v7  ;;  %339 = vmatpush3.bf16.msra.mxu1 %v150_v7 }
  0x16   :  { %315 = vmatmul.mubr.msk.bf16.vlgmr.msra.gmra.mrb[0].mxu0 %vm123_vm0, %v349_v8  ;;  %323 = vmatmul.mubr.msk.bf16.vlgmr.msra.gmra.mrb[0].mxu1 %vm123_vm0, %v350_v9 }
  0x17   :  { %318 = vmatprep.mubr.msk.bf16.mxu0 %vm123_vm0, %v351_v10  ;;  %326 = vmatprep.mubr.msk.bf16.mxu1 %vm123_vm0, %v352_v11 }
  0x1e   :  { %319 = vmatmul.mubr.msk.bf16.gmra.mrb[4].mxu0 %vm123_vm0, %v353_v12  ;;  %327 = vmatmul.mubr.msk.bf16.gmra.mrb[4].mxu1 %vm123_vm0, %v354_v13 }
  0xe9   :  { %v316_v18 = vpop.f32.mrb[0].mxu0  ;;  %v324_v19 = vpop.f32.mrb[0].mxu1 }
  0xea   :  { %v195_v22 = vadd.f32 %v316_v18, %v42_v14  ;;  %v227_v23 = vadd.f32 %v324_v19, %v50_v15  ;;  %v186_v24 = vpop.f32.mrb[1].mxu0  ;;  %v218_v25 = vpop.f32.mrb[1].mxu1 }
  0xeb   :  { %v187_v28 = vadd.f32 %v186_v24, %v40_v16  ;;  %v219_v29 = vadd.f32 %v218_v25, %v48_v17  ;;  %v317_v30 = vpop.f32.mrb[2].mxu0  ;;  %v325_v31 = vpop.f32.mrb[2].mxu1 }
  0xec   :  { %252 = vst.msk [vmem:[%s537_s3 + $0x10] sm:$0xff] %vm249_vm2, %v195_v22  ;;  %260 = vst.msk [vmem:[%s537_s3 + $0x50] sm:$0xff] %vm249_vm2, %v227_v23  ;;  %v198_v32 = vadd.f32 %v317_v30, %v43_v20  ;;  %v230_v33 = vadd.f32 %v325_v31, %v51_v21  ;;  %v189_v34 = vpop.f32.mrb[3].mxu0  ;;  %v221_v35 = vpop.f32.mrb[3].mxu1 }
  0xed   :  { %250 = vst.msk [vmem:[%s537_s3] sm:$0xff] %vm249_vm2, %v187_v28  ;;  %258 = vst.msk [vmem:[%s537_s3 + $0x40] sm:$0xff] %vm249_vm2, %v219_v29  ;;  %v190_v36 = vadd.f32 %v189_v34, %v41_v26  ;;  %v222_v37 = vadd.f32 %v221_v35, %v49_v27 }
  0xee   :  { %253 = vst.msk [vmem:[%s537_s3 + $0x18] sm:$0xff] %vm249_vm2, %v198_v32  ;;  %261 = vst.msk [vmem:[%s537_s3 + $0x58] sm:$0xff] %vm249_vm2, %v230_v33 }
  0xef   :  { %251 = vst.msk [vmem:[%s537_s3 + $0x8] sm:$0xff] %vm249_vm2, %v190_v36  ;;  %259 = vst.msk [vmem:[%s537_s3 + $0x48] sm:$0xff] %vm249_vm2, %v222_v37 }
  0xf1   :  { %v320_v42 = vpop.f32.mrb[4].mxu0  ;;  %v328_v43 = vpop.f32.mrb[4].mxu1 }
  0xf2   :  { %v211_v46 = vadd.f32 %v320_v42, %v46_v38  ;;  %v243_v47 = vadd.f32 %v328_v43, %v54_v39  ;;  %v202_v48 = vpop.f32.mrb[5].mxu0  ;;  %v234_v49 = vpop.f32.mrb[5].mxu1 }
  0xf3   :  { %v203_v52 = vadd.f32 %v202_v48, %v44_v40  ;;  %v235_v53 = vadd.f32 %v234_v49, %v52_v41  ;;  %v321_v54 = vpop.f32.mrb[6].mxu0  ;;  %v329_v55 = vpop.f32.mrb[6].mxu1 }
  0xf4   :  { %256 = vst.msk [vmem:[%s537_s3 + $0x30] sm:$0xff] %vm249_vm2, %v211_v46  ;;  %264 = vst.msk [vmem:[%s537_s3 + $0x70] sm:$0xff] %vm249_vm2, %v243_v47  ;;  %v214_v56 = vadd.f32 %v321_v54, %v47_v44  ;;  %v246_v57 = vadd.f32 %v329_v55, %v55_v45  ;;  %v205_v58 = vpop.f32.mrb[7].mxu0  ;;  %v237_v59 = vpop.f32.mrb[7].mxu1 }
  0xf5   :  { %254 = vst.msk [vmem:[%s537_s3 + $0x20] sm:$0xff] %vm249_vm2, %v203_v52  ;;  %262 = vst.msk [vmem:[%s537_s3 + $0x60] sm:$0xff] %vm249_vm2, %v235_v53  ;;  %v206_v60 = vadd.f32 %v205_v58, %v45_v50  ;;  %v238_v61 = vadd.f32 %v237_v59, %v53_v51 }
  0xf6   :  { %257 = vst.msk [vmem:[%s537_s3 + $0x38] sm:$0xff] %vm249_vm2, %v214_v56  ;;  %265 = vst.msk [vmem:[%s537_s3 + $0x78] sm:$0xff] %vm249_vm2, %v246_v57 }
  0xf7   :  { %255 = vst.msk [vmem:[%s537_s3 + $0x28] sm:$0xff] %vm249_vm2, %v206_v60  ;;  %263 = vst.msk [vmem:[%s537_s3 + $0x68] sm:$0xff] %vm249_vm2, %v238_v61 }

</bundles_post_ra>
